<compile_context>
chip_gen: v7x
topology: tpu7x:2x2x1
jax: 0.10.0
libtpu: 0.0.40
codegen_flags: <defaults>
</compile_context>

<pallas_src>
import jax
import jax.numpy as jnp
from jax import lax
from jax.experimental import pallas as pl
from jax.experimental.pallas import tpu as pltpu


def _round_up(x, m):
    return ((x + m - 1) // m) * m


def simple_nn_kernel(x_ref, w1_ref, b1_ref, w2_ref, b2_ref, o_ref):
    # fc1 (transposed): contract W1 (H, D) with x (TB, D) over D -> (H, TB).
    # Batch lands on the 128-lane axis; f32 accumulation on the MXU.
    hT = lax.dot_general(
        w1_ref[...], x_ref[...],
        dimension_numbers=(((1,), (1,)), ((), ())),
        preferred_element_type=jnp.float32)
    hT = jnp.maximum(hT + b1_ref[...], 0.0)             # bias bcast over lanes + ReLU
    # fc2 (transposed): (1, H) @ (H, TB) -> (1, TB); lane-dense output slab.
    zT = jnp.dot(w2_ref[...], hT, preferred_element_type=jnp.float32)
    zT = zT + b2_ref[0, 0]                              # scalar bias from SMEM
    o_ref[...] = jax.nn.sigmoid(zT).astype(o_ref.dtype)


def simple_nn_forward(x, w1, b1, w2, b2, *,
                      vmem_budget_bytes=8 * 1024 * 1024,
                      max_block_batch=4096,
                      stream_bf16=False):
    """x: (B, D) f32; w1: (16, D); b1: (16,); w2: (1, 16); b2: (1,).  -> (B, 1)."""
    B, D = x.shape
    H = w1.shape[0]                                      # 16 hidden units

    # ---- batch-tile selection (VMEM-budget driven) ---------------------------
    vmem_budget_bytes = min(vmem_budget_bytes, 24 * 1024 * 1024)
    d_lanes = _round_up(D, 128)                          # lane padding of the x tile
    itemsize = 2 if stream_bf16 else 4
    tb_budget = max(128, vmem_budget_bytes // (2 * itemsize * d_lanes))
    TB = min(max_block_batch, (tb_budget // 128) * 128)
    if B > 128:
        # Guarantee >= 2 grid steps so the parallel batch axis splits over
        # both TensorCores on v7x (neutral on single-TC v5e/v6e).
        TB = min(TB, _round_up(pl.cdiv(B, 2), 128))
    if TB >= B:
        TB = B                                           # single block == full batch
    grid = (pl.cdiv(B, TB),)

    # ---- explicit VMEM limit: enough for our buffers, fits v5e/v6e/v7x -------
    x_tile_bytes = 2 * _round_up(TB, 8) * d_lanes * itemsize       # double-buffered x
    param_bytes = 2 * (_round_up(H, 8) * d_lanes + 2 * _round_up(H, 8) * 128) * 4
    out_bytes = 2 * 8 * _round_up(TB, 128) * 4
    vmem_limit = min(max(x_tile_bytes + param_bytes + out_bytes + (4 << 20),
                         16 << 20), 32 << 20)

    b1c = b1.reshape(H, 1).astype(jnp.float32)           # (16, 1): bcast over lanes
    b2s = b2.reshape(1, 1).astype(jnp.float32)           # (1, 1): SMEM scalar
    if stream_bf16:
        x = x.astype(jnp.bfloat16)
        w1 = w1.astype(jnp.bfloat16)

    out = pl.pallas_call(
        simple_nn_kernel,
        out_shape=jax.ShapeDtypeStruct((1, B), jnp.float32),
        grid=grid,
        in_specs=[
            pl.BlockSpec((TB, D), lambda i: (i, 0)),            # streamed x tiles
            pl.BlockSpec((H, D), lambda i: (0, 0)),             # resident W1
            pl.BlockSpec((H, 1), lambda i: (0, 0)),             # resident b1
            pl.BlockSpec((1, H), lambda i: (0, 0)),             # resident W2
            pl.BlockSpec(memory_space=pltpu.MemorySpace.SMEM),  # scalar b2
        ],
        out_specs=pl.BlockSpec((1, TB), lambda i: (0, i)),      # lane-dense output
        compiler_params=pltpu.CompilerParams(
            dimension_semantics=("parallel",),                  # megacore on v7x
            vmem_limit_bytes=vmem_limit),
    )(x, w1, b1c, w2, b2s)

    # (1, B) lane-dense slab -> (B, 1) like PyTorch.
    return out[0, :, None]


def init_params(key, input_dim):
    """Deterministic init mimicking nn.Linear's U(-1/sqrt(fan_in), 1/sqrt(fan_in)).

    Weights stored in PyTorch layout: (out_features, in_features).
    """
    k1, k2, k3, k4 = jax.random.split(key, 4)
    bound1 = 1.0 / jnp.sqrt(jnp.float32(input_dim))
    bound2 = 1.0 / jnp.sqrt(jnp.float32(16.0))
    w1 = jax.random.uniform(k1, (16, input_dim), jnp.float32, -bound1, bound1)
    b1 = jax.random.uniform(k2, (16,), jnp.float32, -bound1, bound1)
    w2 = jax.random.uniform(k3, (1, 16), jnp.float32, -bound2, bound2)
    b2 = jax.random.uniform(k4, (1,), jnp.float32, -bound2, bound2)
    return w1, b1, w2, b2


def _reference(x, w1, b1, w2, b2):
    return jax.nn.sigmoid(jnp.maximum(x @ w1.T + b1, 0.0) @ w2.T + b2)


if __name__ == "__main__":
    key = jax.random.PRNGKey(0)
    kx, kp, kx2 = jax.random.split(key, 3)

    # Small shapes consistent with the module.
    batch, input_dim = 8, 32
    x = jax.random.normal(kx, (batch, input_dim), jnp.float32)
    w1, b1, w2, b2 = init_params(kp, input_dim)

    out = jax.block_until_ready(simple_nn_forward(x, w1, b1, w2, b2))
    ref = _reference(x, w1, b1, w2, b2)
    assert out.shape == (batch, 1)
    assert jnp.allclose(out, ref, atol=1e-5, rtol=1e-5)

    # Multi-step grid with a partial last block (B=300 -> TB=256, grid=(2,)),
    # no host-side padding of the batch.
    batch2 = 300
    x2 = jax.random.normal(kx2, (batch2, input_dim), jnp.float32)
    out2 = jax.block_until_ready(simple_nn_forward(x2, w1, b1, w2, b2))
    ref2 = _reference(x2, w1, b1, w2, b2)
    assert out2.shape == (batch2, 1)
    assert jnp.allclose(out2, ref2, atol=1e-5, rtol=1e-5)

    # Optional bf16 streaming path (f32 accumulation): looser tolerance.
    out3 = jax.block_until_ready(
        simple_nn_forward(x2, w1, b1, w2, b2, stream_bf16=True))
    assert out3.shape == (batch2, 1)
    assert jnp.allclose(out3, ref2, atol=5e-2, rtol=5e-2)

    print("KERNEL_OK")
</pallas_src>

<mosaic_0001>
module attributes {stable_mosaic.version = 11 : i64} {
  func.func @simple_nn_kernel(%arg0: i32, %arg1: memref<8x32xf32, #tpu.memory_space<vmem>>, %arg2: memref<16x32xf32, #tpu.memory_space<vmem>>, %arg3: memref<16x1xf32, #tpu.memory_space<vmem>>, %arg4: memref<1x16xf32, #tpu.memory_space<vmem>>, %arg5: memref<1x1xf32, #tpu.memory_space<smem>>, %arg6: memref<1x8xf32, #tpu.memory_space<vmem>>) attributes {dimension_semantics = [#tpu.dimension_semantics<parallel>], iteration_bounds = array<i64: 1>, scalar_prefetch = 0 : i64, scratch_operands = 0 : i64, tpu.core_type = #tpu.core_type<tc>, window_params = [{transform_indices = @transform_0, window_bounds = array<i64: 8, 32>}, {pipeline_mode = #tpu.pipeline_mode<synchronous>, transform_indices = @transform_1, window_bounds = array<i64: 16, 32>}, {pipeline_mode = #tpu.pipeline_mode<synchronous>, transform_indices = @transform_2, window_bounds = array<i64: 16, 1>}, {pipeline_mode = #tpu.pipeline_mode<synchronous>, transform_indices = @transform_3, window_bounds = array<i64: 1, 16>}, {transform_indices = @transform_4, window_bounds = array<i64: 1, 1>}, {transform_indices = @transform_5, window_bounds = array<i64: 1, 8>}]} {
    %c0 = arith.constant 0 : index
    %c0_0 = arith.constant 0 : index
    %0 = vector.load %arg2[%c0, %c0_0] : memref<16x32xf32, #tpu.memory_space<vmem>>, vector<16x32xf32>
    %c0_1 = arith.constant 0 : index
    %c0_2 = arith.constant 0 : index
    %1 = vector.load %arg1[%c0_1, %c0_2] : memref<8x32xf32, #tpu.memory_space<vmem>>, vector<8x32xf32>
    %cst = arith.constant dense<0.000000e+00> : vector<16x8xf32>
    %2 = tpu.matmul %0, %1, %cst {dimension_numbers = #tpu.dot_dimension_numbers<[1], [1], [0], [0], [0, 0, 1, 0], [], []>} : vector<16x32xf32>, vector<8x32xf32>, vector<16x8xf32> -> vector<16x8xf32>
    %c0_3 = arith.constant 0 : index
    %c0_4 = arith.constant 0 : index
    %3 = vector.load %arg3[%c0_3, %c0_4] : memref<16x1xf32, #tpu.memory_space<vmem>>, vector<16x1xf32>
    %4 = vector.broadcast %3 : vector<16x1xf32> to vector<16x8xf32>
    %5 = arith.addf %2, %4 : vector<16x8xf32>
    %cst_5 = arith.constant 0.000000e+00 : f32
    %6 = vector.broadcast %cst_5 : f32 to vector<16x8xf32>
    %7 = arith.maximumf %5, %6 : vector<16x8xf32>
    %c0_6 = arith.constant 0 : index
    %c0_7 = arith.constant 0 : index
    %8 = vector.load %arg4[%c0_6, %c0_7] : memref<1x16xf32, #tpu.memory_space<vmem>>, vector<1x16xf32>
    %cst_8 = arith.constant dense<0.000000e+00> : vector<1x8xf32>
    %9 = tpu.matmul %8, %7, %cst_8 {dimension_numbers = #tpu.dot_dimension_numbers<[1], [0], [0], [1], [0, 0, 1, 1], [], []>} : vector<1x16xf32>, vector<16x8xf32>, vector<1x8xf32> -> vector<1x8xf32>
    %c0_9 = arith.constant 0 : index
    %c0_10 = arith.constant 0 : index
    %10 = memref.load %arg5[%c0_9, %c0_10] : memref<1x1xf32, #tpu.memory_space<smem>>
    %11 = vector.broadcast %10 : f32 to vector<1x8xf32>
    %12 = arith.addf %9, %11 : vector<1x8xf32>
    %13 = arith.negf %12 : vector<1x8xf32>
    %14 = math.exp %13 : vector<1x8xf32>
    %cst_11 = arith.constant 1.000000e+00 : f32
    %15 = vector.broadcast %cst_11 : f32 to vector<1x8xf32>
    %16 = arith.addf %15, %14 : vector<1x8xf32>
    %17 = arith.divf %15, %16 : vector<1x8xf32>
    %c0_12 = arith.constant 0 : index
    %c0_13 = arith.constant 0 : index
    %18 = vector.load %arg6[%c0_12, %c0_13] : memref<1x8xf32, #tpu.memory_space<vmem>>, vector<1x8xf32>
    tpu.vector_store %arg6[%c0_12, %c0_13], %17 {strides = array<i32>} : memref<1x8xf32, #tpu.memory_space<vmem>>, vector<1x8xf32>,
    return
  }
  func.func @transform_0(%arg0: i32) -> (i32, i32) {
    %c0_i32 = arith.constant 0 : i32
    %c0_i32_0 = arith.constant 0 : i32
    return %arg0, %c0_i32 : i32, i32
  }
  func.func @transform_1(%arg0: i32) -> (i32, i32) {
    %c0_i32 = arith.constant 0 : i32
    %c0_i32_0 = arith.constant 0 : i32
    %c0_i32_1 = arith.constant 0 : i32
    return %c0_i32, %c0_i32_0 : i32, i32
  }
  func.func @transform_2(%arg0: i32) -> (i32, i32) {
    %c0_i32 = arith.constant 0 : i32
    %c0_i32_0 = arith.constant 0 : i32
    %c0_i32_1 = arith.constant 0 : i32
    return %c0_i32, %c0_i32_0 : i32, i32
  }
  func.func @transform_3(%arg0: i32) -> (i32, i32) {
    %c0_i32 = arith.constant 0 : i32
    %c0_i32_0 = arith.constant 0 : i32
    %c0_i32_1 = arith.constant 0 : i32
    return %c0_i32, %c0_i32_0 : i32, i32
  }
  func.func @transform_4(%arg0: i32) -> (i32, i32) {
    %c0_i32 = arith.constant 0 : i32
    %c0_i32_0 = arith.constant 0 : i32
    %c0_i32_1 = arith.constant 0 : i32
    return %c0_i32, %c0_i32_0 : i32, i32
  }
  func.func @transform_5(%arg0: i32) -> (i32, i32) {
    %c0_i32 = arith.constant 0 : i32
    %c0_i32_0 = arith.constant 0 : i32
    return %c0_i32, %arg0 : i32, i32
  }
}

</mosaic_0001>

<bundles_post_ra>
// kernel: tpu_custom_call.1
= control target key start
LH: loop header
LB: loop body
LE: loop exit
PB: predicated region body
PF: predicated region fallthrough
CT: control target
= control target key end

     0   :  { %vm37_vm0 = vcmask 261120   ;;  %s351_s0 = inlined_call_operand.vmem [shape: f32[8,32], index: 0, kind: input, shape index: {}]   ;;  %s352_s1 = inlined_call_operand.vmem [shape: f32[16,32], index: 1, kind: input, shape index: {}]   ;;  %s353_s2 = inlined_call_operand.vmem [shape: f32[16,1], index: 2, kind: input, shape index: {}]   ;;  %s354_s3 = inlined_call_operand.vmem [shape: f32[1,16], index: 3, kind: input, shape index: {}]   ;;  %s355_s4 = inlined_call_operand.<no memory space> [shape: f32[1,1], index: 4, kind: input, shape index: {}]   ;;  %s356_s5 = inlined_call_operand.hbm [shape: f32[1,8], index: 5, kind: output, shape index: {}]  }
   0x1   :  { %v24_v0 = vld [vmem:[%s351_s0] sm:$0xff] }
   0x2   :  { %v22_v1 = vld [vmem:[%s352_s1] sm:$0xff]  ;;  %234 = vmatprep.subr.msk.mxu0 %vm37_vm0, %v24_v0 }
   0x3   :  { %236 = vmatprep.mubr.msk.f32.mxu0 %vm37_vm0, %v22_v1  ;;  %v25_v2 = vld [vmem:[%s353_s2] sm:$0xff] }
   0x4   :  { %11 = vsyncpa [#allocation4], 0  ;;  %235 = vmatpush3.xpose.msk.msra.mxu0 %vm37_vm0, %v24_v0  ;;  %v23_v3 = vld [vmem:[%s352_s1 + $0x8] sm:$0xff]  ;;  %v283_v4 = vmov 0   ;;  %v284_v6 = vmov 0.0|0.0   ;;  %vm285_vm1 = vmmov 0   ;;  %v126_v18 = vstv %s355_s4 }
   0x5   :  { %254 = vset.pattern.permute.xlu0 %v283_v4  ;;  %v26_v5 = vld [vmem:[%s353_s2 + $0x8] sm:$0xff]  ;;  %246 = vmatprep.subr.bf16.mxu1 %v284_v6  ;;  %v286_v7 = vmov 0.0   ;;  %v124_v17 = vld [vmem:[%s354_s3] sm:$0x1]  ;;  %vm127_vm2 = vcmask 130048   ;;  %s287_s29 = smov [#allocation3]  }
   0x6   :  { %29 = vperm.xlu0 %254, %v25_v2   ;;  %243 = vmatprep.mubr.msk.f32.mxu1 %vm285_vm1, %v286_v7  ;;  %s215_s30 = sshll.u32 %s287_s29, 4  ;;  %vm207_vm3 = vcmask 57344   ;;  %s216_s30 = int_to_ptr.vmem [resolvable:$true] %s215_s30 }
   0x7   :  { %237 = vmatmul.mubr.msk.f32.vlgmr.msra.gmra.mrb[0].mxu0 %vm37_vm0, %v23_v3  ;;  %s259_s3 = scalar_lea.vmem %s216_s30, 16  ;;  %s263_s6 = scalar_lea.vmem %s216_s30, 32 }
   0x8   :  { %p260_p0 = scmp.ne.s32.totalorder %s216_s30, %s259_s3  ;;  %p264_p1 = scmp.lt.s32.totalorder %s216_s30, %s216_s30 }
   0x9   :  { %p265_p2 = scmp.lt.s32.totalorder %s263_s6, %s259_s3 }
   0xa   :  { %34 = vperm.xlu0 %254, %v26_v5  }
   0xb   :  { %p266_p3 = por %p265_p2, %p264_p1 }
   0xd   :  { %p267_p4 = pnand %p266_p3, %p260_p0 }
  0x85   :  { %v30_v8 = vpop.permute.xlu0 %29 }
  0x89   :  { %v35_v9 = vpop.permute.xlu0 %34 }
  0xda   :  { %v238_v10 = vpop.f32.mrb[0].mxu0 }
  0xdb   :  { %v119_v11 = vadd.f32 %v238_v10, %v35_v9  ;;  %v113_v12 = vpop.f32.mrb[1].mxu0 }
  0xdc   :  { %v114_v13 = vadd.f32 %v113_v12, %v30_v8 }
  0xdd   :  { %v123_v14 = vmax.f32 %v119_v11, 0.0 }
  0xde   :  { %v122_v15 = vmax.f32 %v114_v13, 0.0 }
  0xe0   :  { %v247_v16 = vpack.c.bf16 %v123_v14, %v122_v15 }
  0xe2   :  { %248 = vmatpush3.bf16.msra.mxu1 %v247_v16 }
  0xe5   :  { %244 = vmatmul.mubr.msk.f32.vlgmr.msra.gmra.mrb[0].mxu1 %vm127_vm2, %v124_v17 }
 0x1b8   :  { %v197_v19 = vpop.f32.mrb[0].mxu1 }
 0x1b9   :  { %v198_v20 = vadd.f32 %v197_v19, %v126_v18  ;;  %v245_v21 = vpop.f32.mrb[1].mxu1 }
 0x1bb   :  { %v227_v22 = vmul.f32 -1.442695, %v198_v20 }
 0x1bd   :  { %255 = vpow2.f32 %v227_v22 }
 0x1c7   :  { %v256_v23 = vpop.eup %255 }
 0x1c8   :  { %v204_v24 = vadd.f32 1.0, %v256_v23 }
 0x1ca   :  { %257 = vrcp.f32 %v204_v24 }
 0x1d4   :  { %v258_v25 = vpop.eup %257 }
 0x1d5   :  { %208 = vst.msk [vmem:[#allocation3] sm:$0x1] %vm207_vm3, %v258_v25 }
 0x1d6   :  { %270 = shalt.err (!%p267_p4)
}
 0x1d7   :  { %s271_s8 = scalar_lea.hbm %s356_s5, 16 }
 0x1d8   :  { %p272_p5 = scmp.ne.s32.totalorder %s356_s5, %s271_s8  ;;  %p275_p6 = scmp.lt.u32.totalorder %s271_s8, %s356_s5 }
 0x1da   :  { %p277_p7 = pnand %p275_p6, %p272_p5 }
 0x1dc   :  { %280 = shalt.err (!%p277_p7)
}
 0x1dd   :  { %218 = dma.vmem_to_hbm [thread:$0]  %s216_s30, 16, %s356_s5, [#allocation4]  }
 0x1de   :  { %281 = dma.done.wait [#allocation4], 16  }
 0x1df   :  { %282 = vsyncadd [#allocation4], 4294967280 }
 0x1e0   :  { %222 = vsyncpa [#allocation4], 1 }

</bundles_post_ra>
